<compile_context>
chip_gen: v7x
topology: tpu7x:2x2x1
jax: 0.10.0
libtpu: 0.0.40
codegen_flags: <defaults>
</compile_context>

<pallas_src>
import math
import functools

import jax
import jax.numpy as jnp
from jax.experimental import pallas as pl
from jax.experimental.pallas import tpu as pltpu


def _round_up(a, b):
    return (a + b - 1) // b * b


def _arcface_kernel(x_ref, wt_ref, winv_ref, label_ref, o_ref, *,
                    s, cos_m, sin_m, th, mm, easy_margin, ls_eps,
                    out_features, tile_n):
    n = pl.program_id(0)                         # out_features tile index

    # --- normalize input rows (F.normalize: x / max(||x||, eps)) ---
    x = x_ref[...].astype(jnp.float32)           # (TILE_M, K_pad)
    eps = 1e-12
    sumsq = jnp.sum(x * x, axis=-1, keepdims=True)
    x_n = x * jax.lax.rsqrt(jnp.maximum(sumsq, eps * eps))

    # --- cosine = x_n @ w_n.T : bf16 MXU matmul (f32 acc) + f32 column rescale ---
    raw = jnp.dot(x_n.astype(jnp.bfloat16), wt_ref[...],
                  preferred_element_type=jnp.float32)      # (TILE_M, TILE_N)
    cosine = raw * winv_ref[...]                 # (1, TILE_N): 1/||w_row|| hoisted out

    # --- margin math (clamped to avoid NaN at |cosine| ~ 1) ---
    sine = jnp.sqrt(jnp.clip(1.0 - cosine * cosine, 0.0, 1.0))
    phi = cosine * cos_m - sine * sin_m
    if easy_margin:
        phi = jnp.where(cosine > 0.0, phi, cosine)
    else:
        phi = jnp.where(cosine > th, phi, cosine - mm)

    # --- one-hot(label) via globally-offset iota compare (scatter_ equivalent) ---
    cols = jax.lax.broadcasted_iota(jnp.int32, cosine.shape, 1) + n * tile_n
    one_hot = (cols == label_ref[...]).astype(jnp.float32)
    if ls_eps > 0:
        one_hot = (1.0 - ls_eps) * one_hot + ls_eps / out_features

    out = one_hot * phi + (1.0 - one_hot) * cosine
    o_ref[...] = (out * s).astype(o_ref.dtype)


def arc_margin_product(x, weight, label, *, s, m, easy_margin, ls_eps,
                       tile_m=128, tile_n=2048):
    """JAX/Pallas equivalent of ArcMarginProduct.forward.

    x:      (B, in_features) float
    weight: (out_features, in_features) float   (PyTorch nn.Linear layout)
    label:  (B,) integer class indices
    """
    B, K = x.shape
    OUT, K_w = weight.shape
    assert K == K_w

    cos_m = math.cos(m)
    sin_m = math.sin(m)
    th = math.cos(math.pi - m)
    mm = math.sin(math.pi - m) * m

    # --- lane/sublane-dense tiling (re-derived per call; sweep tile_n per chip gen) ---
    K_pad = _round_up(K, 128)
    TILE_M = min(int(tile_m), _round_up(B, 8))
    B_pad = _round_up(B, TILE_M)
    TILE_N = min(int(tile_n), _round_up(OUT, 128))
    OUT_pad = _round_up(OUT, TILE_N)

    eps = 1e-12
    x32 = x.astype(jnp.float32)
    w32 = weight.astype(jnp.float32)

    # Hoist per-row weight norms out of the kernel (applied after the matmul).
    w_inv = jax.lax.rsqrt(jnp.maximum(jnp.sum(w32 * w32, axis=1), eps * eps))

    x_p = jnp.zeros((B_pad, K_pad), jnp.float32).at[:B, :K].set(x32)
    wt_p = jnp.zeros((K_pad, OUT_pad), jnp.bfloat16).at[:K, :OUT].set(
        w32.T.astype(jnp.bfloat16))
    winv_p = jnp.zeros((1, OUT_pad), jnp.float32).at[0, :OUT].set(w_inv)
    label_p = jnp.zeros((B_pad, 1), jnp.int32).at[:B, 0].set(
        label.astype(jnp.int32))

    kernel = functools.partial(
        _arcface_kernel,
        s=float(s), cos_m=cos_m, sin_m=sin_m, th=th, mm=mm,
        easy_margin=bool(easy_margin), ls_eps=float(ls_eps),
        out_features=OUT, tile_n=TILE_N)

    # N outermost -> the big weight matrix is DMA'd through VMEM exactly once.
    grid = (OUT_pad // TILE_N, B_pad // TILE_M)

    # Keep double-buffered tiles comfortably inside VMEM on v5e/v6e/v7x.
    blk_bytes = (TILE_M * K_pad * 4          # x tile (f32)
                 + K_pad * TILE_N * 2        # weight tile (bf16)
                 + 8 * TILE_N * 4            # inv-norm row (sublane padded)
                 + TILE_M * 128 * 4          # label column (lane padded)
                 + TILE_M * TILE_N * 4)      # output tile (f32)
    vmem_limit = int(min(max(4 * blk_bytes, 16 * 1024 * 1024),
                         64 * 1024 * 1024))

    out = pl.pallas_call(
        kernel,
        out_shape=jax.ShapeDtypeStruct((B_pad, OUT_pad), jnp.float32),
        grid=grid,
        in_specs=[
            pl.BlockSpec((TILE_M, K_pad), lambda n, mi: (mi, 0)),   # x
            pl.BlockSpec((K_pad, TILE_N), lambda n, mi: (0, n)),    # weight^T (bf16)
            pl.BlockSpec((1, TILE_N), lambda n, mi: (0, n)),        # 1/||w_row||
            pl.BlockSpec((TILE_M, 1), lambda n, mi: (mi, 0)),       # labels
        ],
        out_specs=pl.BlockSpec((TILE_M, TILE_N), lambda n, mi: (mi, n)),
        compiler_params=pltpu.CompilerParams(
            dimension_semantics=("parallel", "parallel"),
            vmem_limit_bytes=vmem_limit,
        ),
    )(x_p, wt_p, winv_p, label_p)

    return out[:B, :OUT]


def xavier_uniform(key, shape, dtype=jnp.float32):
    """Deterministic xavier_uniform_ init matching nn.init semantics."""
    fan_out, fan_in = shape
    limit = math.sqrt(6.0 / (fan_in + fan_out))
    return jax.random.uniform(key, shape, dtype, minval=-limit, maxval=limit)


def arc_margin_product_ref(x, weight, label, *, s, m, easy_margin, ls_eps):
    """Pure-JAX reference mirroring the kernel numerics (bf16 matmul, f32 acc)."""
    eps = 1e-12
    x = x.astype(jnp.float32)
    w = weight.astype(jnp.float32)
    x_n = x * jax.lax.rsqrt(
        jnp.maximum(jnp.sum(x * x, axis=1, keepdims=True), eps * eps))
    w_inv = jax.lax.rsqrt(jnp.maximum(jnp.sum(w * w, axis=1), eps * eps))
    raw = jnp.dot(x_n.astype(jnp.bfloat16), w.T.astype(jnp.bfloat16),
                  preferred_element_type=jnp.float32)
    cosine = raw * w_inv[None, :]
    sine = jnp.sqrt(jnp.clip(1.0 - cosine * cosine, 0.0, 1.0))
    cos_m, sin_m = math.cos(m), math.sin(m)
    th, mm = math.cos(math.pi - m), math.sin(math.pi - m) * m
    phi = cosine * cos_m - sine * sin_m
    phi = (jnp.where(cosine > 0, phi, cosine) if easy_margin
           else jnp.where(cosine > th, phi, cosine - mm))
    one_hot = jax.nn.one_hot(label, weight.shape[0], dtype=jnp.float32)
    if ls_eps > 0:
        one_hot = (1.0 - ls_eps) * one_hot + ls_eps / weight.shape[0]
    return (one_hot * phi + (1.0 - one_hot) * cosine) * s


if __name__ == "__main__":
    # Small shapes chosen to exercise the tiling/padding paths:
    #  - B=20 (padded to 24, 3 batch tiles of 8)
    #  - in_features=32 (padded to 128 lanes)
    #  - out_features=272 (padded to 384, 3 class tiles of 128 -> tests the
    #    globally-offset one-hot compare)
    B, IN, OUT = 20, 32, 272
    S, M = 30.0, 0.5
    EASY_MARGIN = False
    LS_EPS = 0.1

    key = jax.random.PRNGKey(0)
    k_x, k_w, k_l = jax.random.split(key, 3)

    x = jax.random.normal(k_x, (B, IN), dtype=jnp.float32)
    weight = xavier_uniform(k_w, (OUT, IN))
    label = jax.random.randint(k_l, (B,), 0, OUT, dtype=jnp.int32)

    out = arc_margin_product(x, weight, label,
                             s=S, m=M, easy_margin=EASY_MARGIN, ls_eps=LS_EPS,
                             tile_m=8, tile_n=128)
    out = jax.block_until_ready(out)

    ref = arc_margin_product_ref(x, weight, label,
                                 s=S, m=M, easy_margin=EASY_MARGIN, ls_eps=LS_EPS)
    assert out.shape == (B, OUT)
    assert jnp.allclose(out, ref, atol=5e-3, rtol=5e-3), "mismatch vs reference"

    print("KERNEL_OK")
</pallas_src>

<mosaic_0001>
module attributes {stable_mosaic.version = 11 : i64} {
  func.func @_arcface_kernel(%arg0: i32, %arg1: i32, %arg2: memref<8x128xf32, #tpu.memory_space<vmem>>, %arg3: memref<128x128xbf16, #tpu.memory_space<vmem>>, %arg4: memref<1x128xf32, #tpu.memory_space<vmem>>, %arg5: memref<8x1xi32, #tpu.memory_space<vmem>>, %arg6: memref<8x128xf32, #tpu.memory_space<vmem>>) attributes {dimension_semantics = [#tpu.dimension_semantics<parallel>, #tpu.dimension_semantics<parallel>], iteration_bounds = array<i64: 3, 3>, scalar_prefetch = 0 : i64, scratch_operands = 0 : i64, tpu.core_type = #tpu.core_type<tc>, window_params = [{transform_indices = @transform_0, window_bounds = array<i64: 8, 128>}, {transform_indices = @transform_1, window_bounds = array<i64: 128, 128>}, {transform_indices = @transform_2, window_bounds = array<i64: 1, 128>}, {transform_indices = @transform_3, window_bounds = array<i64: 8, 1>}, {transform_indices = @transform_4, window_bounds = array<i64: 8, 128>}]} {
    %c0 = arith.constant 0 : index
    %c0_0 = arith.constant 0 : index
    %0 = vector.load %arg2[%c0, %c0_0] : memref<8x128xf32, #tpu.memory_space<vmem>>, vector<8x128xf32>
    %1 = arith.mulf %0, %0 : vector<8x128xf32>
    %cst = arith.constant dense<0.000000e+00> : vector<8xf32>
    %2 = vector.multi_reduction <add>, %1, %cst [1] : vector<8x128xf32> to vector<8xf32>
    %3 = vector.shape_cast %2 : vector<8xf32> to vector<8x1xf32>
    %cst_1 = arith.constant 1.000000e-24 : f32
    %4 = vector.broadcast %cst_1 : f32 to vector<8x1xf32>
    %5 = arith.maximumf %3, %4 : vector<8x1xf32>
    %6 = math.rsqrt %5 : vector<8x1xf32>
    %7 = vector.broadcast %6 : vector<8x1xf32> to vector<8x128xf32>
    %8 = arith.mulf %0, %7 : vector<8x128xf32>
    %9 = arith.truncf %8 : vector<8x128xf32> to vector<8x128xbf16>
    %c0_2 = arith.constant 0 : index
    %c0_3 = arith.constant 0 : index
    %10 = vector.load %arg3[%c0_2, %c0_3] : memref<128x128xbf16, #tpu.memory_space<vmem>>, vector<128x128xbf16>
    %cst_4 = arith.constant dense<0.000000e+00> : vector<8x128xf32>
    %11 = tpu.matmul %9, %10, %cst_4 {dimension_numbers = #tpu.dot_dimension_numbers<[1], [0], [0], [1], [0, 0, 1, 1], [], []>} : vector<8x128xbf16>, vector<128x128xbf16>, vector<8x128xf32> -> vector<8x128xf32>
    %c0_5 = arith.constant 0 : index
    %c0_6 = arith.constant 0 : index
    %12 = vector.load %arg4[%c0_5, %c0_6] : memref<1x128xf32, #tpu.memory_space<vmem>>, vector<1x128xf32>
    %13 = vector.broadcast %12 : vector<1x128xf32> to vector<8x128xf32>
    %14 = arith.mulf %11, %13 : vector<8x128xf32>
    %15 = arith.mulf %14, %14 : vector<8x128xf32>
    %cst_7 = arith.constant 1.000000e+00 : f32
    %16 = vector.broadcast %cst_7 : f32 to vector<8x128xf32>
    %17 = arith.subf %16, %15 : vector<8x128xf32>
    %cst_8 = arith.constant 0.000000e+00 : f32
    %cst_9 = arith.constant 1.000000e+00 : f32
    %18 = vector.broadcast %cst_8 : f32 to vector<8x128xf32>
    %19 = arith.maximumf %18, %17 : vector<8x128xf32>
    %20 = vector.broadcast %cst_9 : f32 to vector<8x128xf32>
    %21 = arith.minimumf %20, %19 : vector<8x128xf32>
    %22 = math.sqrt %21 : vector<8x128xf32>
    %cst_10 = arith.constant 0.87758255 : f32
    %23 = vector.broadcast %cst_10 : f32 to vector<8x128xf32>
    %24 = arith.mulf %14, %23 : vector<8x128xf32>
    %cst_11 = arith.constant 0.47942555 : f32
    %25 = vector.broadcast %cst_11 : f32 to vector<8x128xf32>
    %26 = arith.mulf %22, %25 : vector<8x128xf32>
    %27 = arith.subf %24, %26 : vector<8x128xf32>
    %cst_12 = arith.constant -0.87758255 : f32
    %28 = vector.broadcast %cst_12 : f32 to vector<8x128xf32>
    %29 = arith.cmpf ogt, %14, %28 : vector<8x128xf32>
    %cst_13 = arith.constant 0.239712775 : f32
    %30 = vector.broadcast %cst_13 : f32 to vector<8x128xf32>
    %31 = arith.subf %14, %30 : vector<8x128xf32>
    %32 = arith.select %29, %27, %31 : vector<8x128xi1>, vector<8x128xf32>
    %33 = tpu.iota {dimensions = array<i32: 1>} : vector<8x128xi32>
    %c128_i32 = arith.constant 128 : i32
    %34 = arith.muli %arg0, %c128_i32 : i32
    %35 = vector.broadcast %34 : i32 to vector<8x128xi32>
    %36 = arith.addi %33, %35 : vector<8x128xi32>
    %c0_14 = arith.constant 0 : index
    %c0_15 = arith.constant 0 : index
    %37 = vector.load %arg5[%c0_14, %c0_15] : memref<8x1xi32, #tpu.memory_space<vmem>>, vector<8x1xi32>
    %38 = vector.broadcast %37 : vector<8x1xi32> to vector<8x128xi32>
    %39 = arith.cmpi eq, %36, %38 : vector<8x128xi32>
    %40 = arith.extui %39 : vector<8x128xi1> to vector<8x128xi32>
    %41 = arith.sitofp %40 : vector<8x128xi32> to vector<8x128xf32>
    %cst_16 = arith.constant 0.899999976 : f32
    %42 = vector.broadcast %cst_16 : f32 to vector<8x128xf32>
    %43 = arith.mulf %42, %41 : vector<8x128xf32>
    %cst_17 = arith.constant 3.67647066E-4 : f32
    %44 = vector.broadcast %cst_17 : f32 to vector<8x128xf32>
    %45 = arith.addf %43, %44 : vector<8x128xf32>
    %46 = arith.mulf %45, %32 : vector<8x128xf32>
    %cst_18 = arith.constant 1.000000e+00 : f32
    %47 = vector.broadcast %cst_18 : f32 to vector<8x128xf32>
    %48 = arith.subf %47, %45 : vector<8x128xf32>
    %49 = arith.mulf %48, %14 : vector<8x128xf32>
    %50 = arith.addf %46, %49 : vector<8x128xf32>
    %cst_19 = arith.constant 3.000000e+01 : f32
    %51 = vector.broadcast %cst_19 : f32 to vector<8x128xf32>
    %52 = arith.mulf %50, %51 : vector<8x128xf32>
    %c0_20 = arith.constant 0 : index
    %c0_21 = arith.constant 0 : index
    %53 = vector.load %arg6[%c0_20, %c0_21] : memref<8x128xf32, #tpu.memory_space<vmem>>, vector<8x128xf32>
    tpu.vector_store %arg6[%c0_20, %c0_21], %52 {strides = array<i32>} : memref<8x128xf32, #tpu.memory_space<vmem>>, vector<8x128xf32>,
    return
  }
  func.func @transform_0(%arg0: i32, %arg1: i32) -> (i32, i32) {
    %c0_i32 = arith.constant 0 : i32
    %c0_i32_0 = arith.constant 0 : i32
    return %arg1, %c0_i32 : i32, i32
  }
  func.func @transform_1(%arg0: i32, %arg1: i32) -> (i32, i32) {
    %c0_i32 = arith.constant 0 : i32
    %c0_i32_0 = arith.constant 0 : i32
    return %c0_i32, %arg0 : i32, i32
  }
  func.func @transform_2(%arg0: i32, %arg1: i32) -> (i32, i32) {
    %c0_i32 = arith.constant 0 : i32
    %c0_i32_0 = arith.constant 0 : i32
    return %c0_i32, %arg0 : i32, i32
  }
  func.func @transform_3(%arg0: i32, %arg1: i32) -> (i32, i32) {
    %c0_i32 = arith.constant 0 : i32
    %c0_i32_0 = arith.constant 0 : i32
    return %arg1, %c0_i32 : i32, i32
  }
  func.func @transform_4(%arg0: i32, %arg1: i32) -> (i32, i32) {
    %c0_i32 = arith.constant 0 : i32
    return %arg1, %arg0 : i32, i32
  }
}

</mosaic_0001>

<bundles_post_ra>
// kernel: tpu_custom_call.1
= control target key start
LH: loop header
LB: loop body
LE: loop exit
PB: predicated region body
PF: predicated region fallthrough
CT: control target
= control target key end

     0   :  { %9 = vsyncpa [#allocation3], 0  ;;  %s1190_s0 = inlined_call_operand.vmem [shape: f32[24,128], index: 0, kind: input, shape index: {}]   ;;  %s1191_s1 = inlined_call_operand.hbm [shape: bf16[128,384], index: 1, kind: input, shape index: {}]   ;;  %s1192_s2 = inlined_call_operand.vmem [shape: f32[1,384], index: 2, kind: input, shape index: {}]   ;;  %s1193_s3 = inlined_call_operand.vmem [shape: s32[24,1], index: 3, kind: input, shape index: {}]   ;;  %s1194_s4 = inlined_call_operand.hbm [shape: f32[24,384], index: 4, kind: output, shape index: {}]  }
   0x1   :  { %11 = vsyncpa [#allocation3 + $0x1], 0 }
   0x2   :  { %12 = vsyncpa [#allocation4], 0 }
   0x3   :  { %14 = vsyncpa [#allocation4 + $0x1], 0  ;;  %s932_s15 = smov 0   ;;  %s934_s16 = smov 0  }
   0x4   :  { %s936_s17 = smov 0   ;;  %s938_s18 = smov 0  }
   0x5   :  { %s940_s19 = smov 0   ;;  %s942_s20 = smov 0  }
   0x6   :  { %s944_s21 = smov 0   ;;  %s946_s22 = smov 0  }
   0x7   :  { %s948_s23 = smov 0   ;;  %s950_s24 = smov 0  }
   0x8   :  { %s952_s25 = smov 0  }
   0x9 LB: > { %s567_s26 = sadd.s32 4294967295, %s897_s25   ;;  %s568_s27 = sadd.s32 4294967294, %s897_s25   ;;  %s897_s25 = sphi %s952_s25, %s20_s25   ;;  %s893_s24 = sphi %s950_s24, %s1218_s24   ;;  %s889_s23 = sphi %s948_s23, %s1217_s23   ;;  %s885_s22 = sphi %s946_s22, %s1216_s22   ;;  %s881_s21 = sphi %s944_s21, %s1215_s21   ;;  %s877_s20 = sphi %s942_s20, %s1214_s20   ;;  %s873_s19 = sphi %s940_s19, %s1213_s19   ;;  %s869_s18 = sphi %s938_s18, %s1212_s18   ;;  %s865_s17 = sphi %s936_s17, %s1211_s17   ;;  %s861_s16 = sphi %s934_s16, %s1210_s16   ;;  %s857_s15 = sphi %s932_s15, %s1209_s15  }
   0xa   : > { %s29_s28 = sadd.s32 1, %s889_s23  ;;  %s32_s29 = sadd.s32 1, %s893_s24 }
   0xb   : > { %p30_p0 = scmp.ge.s32.totalorder %s29_s28, 3  ;;  %s65_s30 = sadd.s32 1, %s877_s20 }
   0xc   : > { %p72_p1 = scmp.ne.s32.totalorder %s877_s20, %s873_s19  ;;  %p73_p2 = scmp.eq.s32.totalorder %s897_s25, 0 }
   0xd   : > { %s1220_s28 = smov (%p30_p0, %s29_s28), 0  ;;  %s1222_s29 = smov (!%p30_p0, %s32_s29), %s893_s24 }
   0xe   : > { %1198 = sst [smem:[#allocation8_spill]] %s1220_s28  ;;  %p996_p3 = por %p73_p2, %p72_p1 }
   0xf   : > { %p78_p4 = scmp.ne.s32.totalorder %s873_s19, %s869_s18  ;;  %p34_p5 = scmp.ge.s32.totalorder %s1222_s29, 3 }
  0x10   : > { %p79_p6 = scmp.eq.s32.totalorder %s567_s26, 0  ;;  %s140_s6 = ssub.s32 %s889_s23, %s1220_s28 }
  0x11   : > { %s145_s7 = sadd.s32 1, %s865_s17  ;;  %s1224_s29 = smov (%p34_p5, %s1222_s29), 0 }
  0x12   : > { %1200 = sst [smem:[#allocation9_spill]] %s1224_s29  ;;  %p1006_p7 = por %p79_p6, %p78_p4 }
  0x13   : > { %p155_p8 = scmp.ne.s32.totalorder %s865_s17, %s861_s16  ;;  %s62_s9 = ssub.s32 %s893_s24, %s1224_s29 }
  0x14   : > { %p156_p9 = scmp.eq.s32.totalorder %s567_s26, 8  ;;  %p63_p10 = scmp.eq.s32.totalorder %s62_s9, 0 }
  0x15   : > { %s142_s10 = sor.u32 %s140_s6, %s62_s9  ;;  %p161_p13 = scmp.ne.s32.totalorder %s861_s16, %s857_s15 }
  0x16   : > { %p143_p11 = scmp.eq.s32.totalorder %s142_s10, 0  ;;  %p1014_p12 = por %p156_p9, %p155_p8 }
  0x17   : > { %s1019_s12 = scalar_select %p63_p10, %s877_s20, %s65_s30  }
  0x18   : > { %s1202_s11 = scalar_select %p1014_p12, 1, 0 }
  0x19   : > { %s1022_s13 = scalar_select %p143_p11, %s865_s17, %s145_s7  }
  0x1a   : > { %p162_p0 = scmp.eq.s32.totalorder %s568_s27, 8  ;;  %p636_p1 = scmp.lt.s32.totalorder %s897_s25, 9 }
  0x1b   : > { %s189_s18 = sand.u32 1, %s877_s20   ;;  %s572_s6 = sshll.u32 %s893_s24, 6 }
  0x1c   : > { %p1027_p2 = por %p162_p0, %p161_p13  ;;  %s571_s26 = sshll.u32 %s189_s18, 6 }
  0x1d   : > { %s1036_s29 = scalar_lea.hbm %s1191_s1, %s572_s6  ;;  %s193_s30 = scalar_lea.vmem [#allocation2], %s571_s26 }
  0x1e   : > { %s1203_s14 = scalar_select %p1027_p2, 1, 0 }
  0x1f   : > { %s199_s7 = sshll.u32 %s193_s30, 4  ;;  %p1042_p4 = pnand %p636_p1, %p996_p3  ;;  %s1038_s7 = int_to_ptr.vmem [resolvable:$true] %s199_s7 }
  0x20   : > { %s1046_s28 = scalar_lea.sflag [#allocation3], %s189_s18  ;;  %s745_s9 = scalar_lea.hbm %s1036_s29, 1024 }
  0x21   : > { %p746_p5 = scmp.ne.s32.totalorder %s1036_s29, %s745_s9  ;;  %p747_p6 = pneg %p1042_p4 }
  0x22   : > { %s750_s5 = scalar_lea.hbm %s1191_s1, 3072  ;;  %p751_p3 = scmp.lt.u32.totalorder %s1036_s29, %s1191_s1 }
  0x23   : > { %p748_p8 = pnand %p747_p6, %p746_p5  ;;  %p752_p10 = scmp.lt.u32.totalorder %s750_s5, %s745_s9 }
  0x24   : > { %p754_p13 = scmp.lt.u32.totalorder %s745_s9, %s1036_s29 }
  0x25   : > { %p749_p9 = pneg %p748_p8  ;;  %p753_p11 = por %p752_p10, %p751_p3 }
  0x27   : > { %p755_p0 = por %p754_p13, %p753_p11 }
  0x29   : > { %p756_p1 = pnand %p755_p0, %p749_p9 }
  0x2b   : > { %759 = shalt.err (!%p756_p1)
}
  0x2c   : > { %s760_s18 = scalar_lea.vmem %s1038_s7, 1024  ;;  %s899_s26 = smov [#allocation2]  }
  0x2d   : > { %p761_p5 = scmp.ne.s32.totalorder %s1038_s7, %s760_s18  ;;  %s765_s6 = sshll.u32 %s899_s26, 4  ;;  %s766_s6 = int_to_ptr.vmem [resolvable:$false] %s765_s6 }
  0x2e   : > { %s767_s10 = scalar_lea.vmem %s766_s6, 2048  ;;  %p768_p12 = scmp.lt.s32.totalorder %s1038_s7, %s766_s6 }
  0x2f   : > { %p763_p8 = pnand %p761_p5, %p747_p6  ;;  %p769_p3 = scmp.lt.s32.totalorder %s767_s10, %s760_s18 }
  0x31   : > { %p764_p2 = pneg %p763_p8  ;;  %p770_p10 = por %p769_p3, %p768_p12 }
  0x33   : > { %p771_p11 = pnand %p770_p10, %p764_p2 }
  0x35   : > { %774 = shalt.err (!%p771_p11)
}
  0x36   : > { %s900_s9 = smov 192   ;;  %s901_s5 = smov 64  }
  0x37   : > { %s902_s30 = smov 4   ;;  %p573_p6 = scmp.ge.s32.totalorder %s897_s25, 1 }
  0x38   : > { %631 = dma.hbm_to_vmem [thread:$0]  (!%p1042_p4), %s1036_s29, 1024, %s1038_s7, %s1046_s28, %s900_s9, %s901_s5, %s902_s30  }
  0x39   : > { %p220_p9 = scmp.lt.s32.totalorder %s897_s25, 10 }
  0x3b   : > { %p221_p13 = pnand %p573_p6, %p220_p9 }
  0x3c   : > { %s226_s18 = sand.u32 (!%p221_p13), 1, %s873_s19  }
  0x3d   : > { %224 = sbr.rel (%p221_p13) target bundleno = 499 (0x1f3), region = 36  ;;  %s574_s26 = sshll.u32 (!%p221_p13), %s226_s18, 6 }
  0x3e   : > { %s227_s6 = scalar_lea.sflag (!%p221_p13), [#allocation3], %s226_s18  ;;  %s1077_s10 = scalar_lea.vmem (!%p221_p13), [#allocation2], %s574_s26 }
  0x44   : > { %848 = dma.done.wait (%p1006_p7), %s227_s6, 1024  }
  0x45   : > { %850 = vsyncadd (%p1006_p7), %s227_s6, 4294966272  ;;  %p266_p12 = scmp.lt.s32.totalorder %s881_s21, 2  ;;  %v903_v0 = vmov 0.0   ;;  %v733_v3 = vld [vmem:[%s1077_s10] sm:$0xff]   ;;  %v734_v4 = vld [vmem:[%s1077_s10 + $0x8] sm:$0xff]   ;;  %vm904_vm0 = vmmov 0   ;;  %v415_v20 = vlaneseq }
  0x46   : > { %603 = vmatprep.subr.bf16.mxu0 %v903_v0  ;;  %v735_v5 = vld [vmem:[%s1077_s10 + $0x10] sm:$0xff]   ;;  %v736_v6 = vld [vmem:[%s1077_s10 + $0x18] sm:$0xff]   ;;  %v737_v7 = vld [vmem:[%s1077_s10 + $0x20] sm:$0xff]   ;;  %619 = vmatprep.mubr.msk.bf16.mxu0 %vm904_vm0, %v903_v0  ;;  %v905_v11 = vmov 0   ;;  %p270_p7 = scmp.lt.s32.totalorder %s885_s22, 2  ;;  %s623_s7 = smul.u32 3, %s881_s21 }
  0x47   : > { %s1086_s28 = scalar_select %p266_p12, %s881_s21, 2  ;;  %604 = vmatpush3.bf16.msra.mxu0 %v733_v3  ;;  %v738_v8 = vld [vmem:[%s1077_s10 + $0x28] sm:$0xff]   ;;  %v739_v9 = vld [vmem:[%s1077_s10 + $0x30] sm:$0xff]   ;;  %v740_v10 = vld [vmem:[%s1077_s10 + $0x38] sm:$0xff]   ;;  %732 = vset.pattern.permute.xlu0 %v905_v11  ;;  %v416_v26 = vand.u32 127, %v415_v20 }
  0x48   : > { %605 = vmatprep.subr.bf16.mxu0 %v903_v0  ;;  %s271_s18 = scalar_select %p270_p7, %s885_s22, 2 }
  0x49   : > { %s576_s29 = sshll.u32 %s1086_s28, 3  ;;  %s588_s28 = sshll.u32 %s885_s22, 7 }
  0x4a   : > { %s269_s8 = scalar_lea.vmem %s1190_s0, %s576_s29  ;;  %s276_s30 = scalar_lea.vmem %s1193_s3, %s576_s29  ;;  %v418_v28 = vstv %s588_s28 }
  0x4b   : > { %v278_v1 = vld [vmem:[%s269_s8] sm:$0xff]  ;;  %606 = vmatpush3.bf16.msra.mxu0 %v734_v4  ;;  %s272_s10 = scalar_lea.vmem %s1192_s2, %s271_s18  ;;  %v419_v30 = vadd.s32 %v418_v28, %v416_v26  ;;  %s263_s29 = sand.u32 1, %s861_s16  }
  0x4c   : > { %v279_v2 = vmul.f32 %v278_v1, %v278_v1  ;;  %607 = vmatprep.subr.bf16.mxu0 %v903_v0  ;;  %v420_v12 = vld [vmem:[%s276_s30] sm:$0xff]  ;;  %s575_s27 = sshll.u32 %s263_s29, 3  ;;  %s447_s8 = sadd.s32 %s885_s22, %s623_s7 }
  0x4d   : > { %v586_v18 = vld [vmem:[%s272_s10] ss:$0 sm:$0xff]  ;;  %s591_s9 = sshll.u32 %s447_s8, 7  ;;  %s265_s5 = scalar_lea.vmem [#allocation5], %s575_s27 }
  0x4e   : > { %280 = vadd.xlane.f32.xlu0 %v279_v2  ;;  %s451_s30 = sshll.u32 %s265_s5, 4  ;;  %s1128_s21 = scalar_lea.hbm %s1194_s4, %s591_s9  ;;  %s1130_s30 = int_to_ptr.vmem [resolvable:$true] %s451_s30 }
  0x4f   : > { %608 = vmatpush3.bf16.msra.mxu0 %v735_v5  ;;  %s436_s22 = scalar_lea.sflag [#allocation4], %s263_s29  ;;  %s775_s6 = scalar_lea.vmem %s1130_s30, 128 }
  0x50   : > { %609 = vmatprep.subr.bf16.mxu0 %v903_v0  ;;  %p776_p2 = scmp.ne.s32.totalorder %s1130_s30, %s775_s6  ;;  %p1205_p4 = scmp.ne.s32.totalorder %s1202_s11, 0 }
  0x51   : > { %s906_s10 = smov [#allocation5]  }
  0x52   : > { %p777_p0 = pnand %p776_p2, %p1205_p4  ;;  %s779_s28 = sshll.u32 %s906_s10, 4  ;;  %s780_s28 = int_to_ptr.vmem [resolvable:$false] %s779_s28 }
  0x53   : > { %610 = vmatpush3.bf16.msra.mxu0 %v736_v6  ;;  %s781_s7 = scalar_lea.vmem %s780_s28, 256  ;;  %p782_p5 = scmp.lt.s32.totalorder %s1130_s30, %s780_s28 }
  0x54   : > { %611 = vmatprep.subr.bf16.mxu0 %v903_v0  ;;  %p778_p1 = pneg %p777_p0  ;;  %p783_p8 = scmp.lt.s32.totalorder %s781_s7, %s775_s6 }
  0x56   : > { %p784_p3 = por %p783_p8, %p782_p5 }
  0x57   : > { %612 = vmatpush3.bf16.msra.mxu0 %v737_v7 }
  0x58   : > { %613 = vmatprep.subr.bf16.mxu0 %v903_v0  ;;  %p785_p10 = pnand %p784_p3, %p778_p1 }
  0x5b   : > { %614 = vmatpush3.bf16.msra.mxu0 %v738_v8 }
  0x5c   : > { %615 = vmatprep.subr.bf16.mxu0 %v903_v0 }
  0x5f   : > { %616 = vmatpush3.bf16.msra.mxu0 %v739_v9 }
  0x60   : > { %617 = vmatprep.subr.bf16.mxu0 %v903_v0 }
  0x63   : > { %618 = vmatpush3.bf16.msra.mxu0 %v740_v10 }
  0x64   : > { %422 = vperm.xlu0 %732, %v420_v12  }
  0xdb   : > { %v281_v13 = vpop.xlane.xlu0 %280 }
  0xdc   : > { %v282_v14 = vmax.f32 %v281_v13, 1e-24 }
  0xde   : > { %741 = vrsqrt.f32 %v282_v14 }
  0xe3   : > { %v423_v32 = vpop.permute.xlu0 %422 }
  0xe4   : > { %vm424_vm1 = vcmp.eq.s32.totalorder %v419_v30, %v423_v32 }
  0xe5   : > { %v589_v33 = vsel %vm424_vm1, 1.0, %v903_v0 }
  0xe6   : > { %v427_v34 = vmul.f32 0.9, %v589_v33 }
  0xe8   : > { %v742_v15 = vpop.eup %741  ;;  %v428_v37 = vadd.f32 0.00036764707, %v427_v34 }
  0xe9   : > { %v284_v16 = vmul.f32 %v742_v15, %v278_v1 }
  0xea   : > { %v430_v43 = vsub.f32 1.0, %v428_v37 }
  0xeb   : > { %v285_v17 = vpack.c.bf16 %v284_v16, %v284_v16 }
  0xed   : > { %620 = vmatmul.mubr.bf16.vlgmr.msra.gmra.mrb[0].mxu0 %v285_v17 }
 0x1c0   : > { %v384_v19 = vpop.f32.mrb[0].mxu0 }
 0x1c1   : > { %v397_v21 = vmul.f32 %v586_v18, %v384_v19  ;;  %v621_v22 = vpop.f32.mrb[1].mxu0 }
 0x1c2   : > { %v387_v23 = vpop.f32.mrb[2].mxu0 }
 0x1c3   : > { %v398_v24 = vmul.f32 %v397_v21, %v397_v21  ;;  %v622_v25 = vpop.f32.mrb[3].mxu0  ;;  %v409_v41 = vmul.f32 0.87758255, %v397_v21  ;;  %v587_v45 = vadd.f32 -0.23971277, %v397_v21  ;;  %v431_v48 = vmul.f32 %v430_v43, %v397_v21 }
 0x1c4   : > { %vm412_vm4 = vcmp.gt.f32.partialorder %v397_v21, -0.87758255 }
 0x1c5   : > { %v399_v27 = vsub.f32 1.0, %v398_v24 }
 0x1c7   : > { %v400_v29 = vmax.f32 %v399_v27, 0.0 }
 0x1c9   : > { %v401_v31 = vmin.f32 %v400_v29, 1.0 }
 0x1cb   : > { %743 = vrsqrt.f32 %v401_v31  ;;  %vm404_vm2 = vcmp.eq.f32.partialorder %v401_v31, inf  ;;  %v407_v38 = vand.u32 2147483648, %v401_v31  ;;  %vm406_vm3 = vcmp.eq.f32.partialorder %v401_v31, 0.0 }
 0x1d5   : > { %v744_v35 = vpop.eup %743 }
 0x1d6   : > { %v403_v36 = vmul.f32 %v744_v35, %v401_v31 }
 0x1d8   : > { %v405_v39 = vsel %vm404_vm2, %v401_v31, %v403_v36 }
 0x1d9   : > { %v408_v40 = vsel %vm406_vm3, %v407_v38, %v405_v39 }
 0x1da   : > { %v410_v42 = vmul.f32 0.47942555, %v408_v40 }
 0x1dc   : > { %v411_v44 = vsub.f32 %v409_v41, %v410_v42 }
 0x1de   : > { %v414_v46 = vsel %vm412_vm4, %v411_v44, %v587_v45 }
 0x1df   : > { %v429_v47 = vmul.f32 %v428_v37, %v414_v46 }
 0x1e1   : > { %v432_v49 = vadd.f32 %v431_v48, %v429_v47 }
 0x1e3   : > { %v433_v50 = vmul.f32 30.0, %v432_v49 }
 0x1e5   : > { %434 = vst [vmem:[%s265_s5] sm:$0xff] %v433_v50 }
 0x1e6   : > { %788 = shalt.err (!%p785_p10)
}
 0x1e7   : > { %s789_s29 = scalar_lea.hbm %s1128_s21, 128  ;;  %s793_s9 = scalar_lea.hbm %s1194_s4, 1152 }
 0x1e8   : > { %p790_p11 = scmp.ne.s32.totalorder %s1128_s21, %s789_s29  ;;  %p794_p13 = scmp.lt.u32.totalorder %s1128_s21, %s1194_s4 }
 0x1e9   : > { %p795_p12 = scmp.lt.u32.totalorder %s793_s9, %s789_s29  ;;  %p797_p2 = scmp.lt.u32.totalorder %s789_s29, %s1128_s21 }
 0x1ea   : > { %p791_p6 = pnand %p790_p11, %p1205_p4 }
 0x1eb   : > { %p796_p7 = por %p795_p12, %p794_p13 }
 0x1ec   : > { %p792_p9 = pneg %p791_p6 }
 0x1ed   : > { %p798_p0 = por %p797_p2, %p796_p7 }
 0x1ef   : > { %p799_p1 = pnand %p798_p0, %p792_p9 }
 0x1f1   : > { %802 = shalt.err (!%p799_p1)
}
 0x1f2   : > { %626 = dma.vmem_to_hbm [thread:$0]  (%p1205_p4), %s1130_s30, 128, %s1128_s21, %s436_s22  }
 0x1f3 PF: > { %p637_p5 = scmp.ge.s32.totalorder %s897_s25, 2  ;;  %s463_s26 = sand.u32 1, %s857_s15  }
 0x1f4   : > { %p1206_p8 = scmp.ne.s32.totalorder %s1203_s14, 0  ;;  %s464_s6 = scalar_lea.sflag [#allocation4], %s463_s26 }
 0x1f6   : > { %p633_p3 = pnand %p637_p5, %p1206_p8 }
 0x1f8   : > { %852 = dma.done.wait (!%p633_p3), %s464_s6, 128  }
 0x1f9   : > { %854 = vsyncadd (!%p633_p3), %s464_s6, 4294967168  ;;  %s20_s25 = sadd.s32 1, %s897_s25   ;;  %s1207_s11 = sld [smem:[#allocation8_spill]] }
 0x1fa   : > { %p17_p10 = scmp.ge.s32.totalorder %s20_s25, 11   ;;  %s1208_s30 = sld [smem:[#allocation9_spill]] }
 0x1fb   : > { %s1209_s15 = smov %s861_s16  ;;  %s1210_s16 = smov %s865_s17 }
 0x1fc   : > { %s1211_s17 = smov %s1022_s13  ;;  %s1212_s18 = smov %s873_s19 }
 0x1fd   : > { %s1213_s19 = smov %s877_s20  ;;  %s1214_s20 = smov %s1019_s12 }
 0x1fe   : > { %s1215_s21 = smov %s889_s23  ;;  %s1216_s22 = smov %s893_s24 }
 0x1ff   : > { %s1217_s23 = smov %s1207_s11  ;;  %19 = sbr.rel (!%p17_p10) target bundleno = 9 (0x9), region = 90 }
 0x200   : > { %s1218_s24 = smov %s1208_s30 }
 0x206   :  { %469 = vsyncpa [#allocation3], 1 }
 0x207   :  { %471 = vsyncpa [#allocation3 + $0x1], 1 }
 0x208   :  { %472 = vsyncpa [#allocation4], 1 }
 0x209   :  { %474 = vsyncpa [#allocation4 + $0x1], 1 }

</bundles_post_ra>
